<compile_context>
chip_gen: v7x
topology: tpu7x:2x2x1
jax: 0.10.0
libtpu: 0.0.40
codegen_flags: <defaults>
</compile_context>

<pallas_src>
import jax
import jax.numpy as jnp
from jax.experimental import pallas as pl
from jax.experimental.pallas import tpu as pltpu

INPUT_SIZE = 28 * 28    # 784
HIDDEN = 50
NUM_CLASSES = 10

HIDDEN_PAD = 128        # lane-pad 50  -> 128
OUT_PAD = 128           # lane-pad 10  -> 128
DEFAULT_TB = 4096       # batch tile (rows); ~29 MiB VMEM double-buffered (f32 x)
VMEM_LIMIT_BYTES = 48 * 1024 * 1024   # < 64 MiB (v7x physical), > 32 MiB default


def _round_up(n, m):
    return ((n + m - 1) // m) * m


def _choose_tiling(B, desired_tb):
    """Pick (b_pad, tb) with tb dividing b_pad and (tb % 8 == 0 or tb == b_pad),
    avoiding a full-tile jnp.pad of x wherever possible."""
    desired_tb = max(8, _round_up(desired_tb, 8))

    if B <= desired_tb:
        # Single tile covering the whole batch: block first-dim == full array
        # dim, so no 8-row padding is required at all.
        if B >= 1024 and B % 16 == 0:
            return B, B // 2            # >=2 grid steps -> both v7x TCs busy
        return B, B

    # Multi-tile: round batch up to a sublane multiple only (<= 7 rows).
    b8 = _round_up(B, 8)
    n8 = b8 // 8
    target_steps = -(-b8 // desired_tb)  # ceil
    # Smallest divisor of n8 that is >= target_steps (n8 itself always works).
    best = None
    d = 1
    while d * d <= n8:
        if n8 % d == 0:
            for c in (d, n8 // d):
                if c >= target_steps and (best is None or c < best):
                    best = c
        d += 1
    tb = b8 // best
    if tb >= max(8, desired_tb // 4):
        return b8, tb
    # Pathological (near-prime) batch size: fall back to padding to a full tile.
    return _round_up(B, desired_tb), desired_tb


def _mlp_kernel(x_ref, w1t_ref, b1_ref, w2t_ref, b2_ref, o_ref):
    # x_ref:   (TB, 784) f32
    # w1t_ref: (784, 128) fc1 weight, transposed + zero-padded (compute dtype)
    # b1_ref:  (1, 128)   f32
    # w2t_ref: (128, 128) fc2 weight, transposed + zero-padded (compute dtype)
    # b2_ref:  (1, 128)   f32
    # o_ref:   (TB, 128)  lane-dense output; real logits are [:, :10]
    x = x_ref[...].astype(w1t_ref.dtype)                     # VPU cast (cheap)
    h = jnp.dot(x, w1t_ref[...],
                preferred_element_type=jnp.float32) + b1_ref[...]
    h = jnp.maximum(h, 0.0)                                  # ReLU on VPU
    y = jnp.dot(h.astype(w2t_ref.dtype), w2t_ref[...],
                preferred_element_type=jnp.float32) + b2_ref[...]
    o_ref[...] = y.astype(o_ref.dtype)


def prepare_params(w1, b1, w2, b2, compute_dtype=jnp.bfloat16):
    """One-time parameter prep: transpose to (in, out) layout and zero-pad the
    feature dims to 128 lanes.  PyTorch layout in: w1 (50,784), b1 (50,),
    w2 (10,50), b2 (10,).  Weights are stored in `compute_dtype` (bf16 by
    default -> MXU-native operands); biases stay f32 (added to the f32 acc)."""
    w1t = jnp.zeros((INPUT_SIZE, HIDDEN_PAD), compute_dtype).at[:, :HIDDEN].set(
        w1.T.astype(compute_dtype))
    b1p = jnp.zeros((1, HIDDEN_PAD), jnp.float32).at[:, :HIDDEN].set(
        b1.astype(jnp.float32))
    w2t = jnp.zeros((HIDDEN_PAD, OUT_PAD), compute_dtype).at[:HIDDEN, :NUM_CLASSES].set(
        w2.T.astype(compute_dtype))
    b2p = jnp.zeros((1, OUT_PAD), jnp.float32).at[:, :NUM_CLASSES].set(
        b2.astype(jnp.float32))
    return w1t, b1p, w2t, b2p


def nn_forward_prepared(x, w1t, b1p, w2t, b2p, *, tb=DEFAULT_TB,
                        return_padded=False):
    """Forward pass with pre-prepared (transposed + padded) params.
    x: (B, 784) float32.
    Returns (B, 10) f32 logits, or the raw (b_pad, 128) padded buffer when
    return_padded=True (avoids one extra HBM pass; real logits are
    out[:B, :NUM_CLASSES])."""
    B = x.shape[0]
    b_pad, tb = _choose_tiling(B, tb)
    if b_pad != B:
        # Rare path: <=7 sublane rows, or the pathological full-tile fallback.
        x = jnp.pad(x, ((0, b_pad - B), (0, 0)))

    grid = (b_pad // tb,)

    flops = 2 * b_pad * INPUT_SIZE * HIDDEN_PAD + 2 * b_pad * HIDDEN_PAD * OUT_PAD
    bytes_accessed = (b_pad * INPUT_SIZE * x.dtype.itemsize
                      + INPUT_SIZE * HIDDEN_PAD * w1t.dtype.itemsize
                      + HIDDEN_PAD * OUT_PAD * w2t.dtype.itemsize
                      + (HIDDEN_PAD + OUT_PAD) * 4
                      + b_pad * OUT_PAD * 4)

    out = pl.pallas_call(
        _mlp_kernel,
        out_shape=jax.ShapeDtypeStruct((b_pad, OUT_PAD), jnp.float32),
        grid_spec=pltpu.PrefetchScalarGridSpec(
            num_scalar_prefetch=0,
            grid=grid,
            in_specs=[
                # x: tiled along batch (auto-pipelined HBM->VMEM DMA)
                pl.BlockSpec((tb, INPUT_SIZE), lambda i: (i, 0)),
                # weights / biases: constant index_map -> VMEM-resident
                # (small enough that default double-buffering is negligible)
                pl.BlockSpec((INPUT_SIZE, HIDDEN_PAD), lambda i: (0, 0)),
                pl.BlockSpec((1, HIDDEN_PAD), lambda i: (0, 0)),
                pl.BlockSpec((HIDDEN_PAD, OUT_PAD), lambda i: (0, 0)),
                pl.BlockSpec((1, OUT_PAD), lambda i: (0, 0)),
            ],
            out_specs=pl.BlockSpec((tb, OUT_PAD), lambda i: (i, 0)),
        ),
        compiler_params=pltpu.CompilerParams(
            dimension_semantics=("parallel",),
            vmem_limit_bytes=VMEM_LIMIT_BYTES),
        cost_estimate=pl.CostEstimate(flops=flops, transcendentals=0,
                                      bytes_accessed=bytes_accessed),
    )(x, w1t, b1p, w2t, b2p)

    if return_padded:
        return out
    return out[:B, :NUM_CLASSES]


def nn_forward(x, w1, b1, w2, b2, *, tb=DEFAULT_TB,
               compute_dtype=jnp.bfloat16):
    """Convenience entry point taking PyTorch-layout params.  For repeated
    calls, call prepare_params once and use nn_forward_prepared."""
    w1t, b1p, w2t, b2p = prepare_params(w1, b1, w2, b2, compute_dtype)
    return nn_forward_prepared(x, w1t, b1p, w2t, b2p, tb=tb)


def init_params(key):
    """Deterministic init matching nn.Linear shapes (uniform +-1/sqrt(fan_in))."""
    k1, k2, k3, k4 = jax.random.split(key, 4)
    lim1 = 1.0 / jnp.sqrt(INPUT_SIZE)
    lim2 = 1.0 / jnp.sqrt(HIDDEN)
    w1 = jax.random.uniform(k1, (HIDDEN, INPUT_SIZE), jnp.float32, -lim1, lim1)
    b1 = jax.random.uniform(k2, (HIDDEN,), jnp.float32, -lim1, lim1)
    w2 = jax.random.uniform(k3, (NUM_CLASSES, HIDDEN), jnp.float32, -lim2, lim2)
    b2 = jax.random.uniform(k4, (NUM_CLASSES,), jnp.float32, -lim2, lim2)
    return w1, b1, w2, b2


if __name__ == "__main__":
    key = jax.random.PRNGKey(0)
    kx, kx2, kp = jax.random.split(key, 3)
    w1, b1, w2, b2 = init_params(kp)

    # One-time param prep (hoisted out of the per-call path).
    w1t, b1p, w2t, b2p = prepare_params(w1, b1, w2, b2)               # bf16 ops
    w1t32, b1p32, w2t32, b2p32 = prepare_params(w1, b1, w2, b2,
                                                compute_dtype=jnp.float32)

    # Small check (batch=2) — single full-dim tile, no padding, bf16 operands.
    B = 2
    x = jax.random.normal(kx, (B, INPUT_SIZE), jnp.float32)
    out = nn_forward_prepared(x, w1t, b1p, w2t, b2p)
    jax.block_until_ready(out)
    ref = jnp.maximum(x @ w1.T + b1, 0.0) @ w2.T + b2
    assert out.shape == (B, NUM_CLASSES)
    # bf16 operands / f32 accumulate vs pure-f32 reference.
    assert jnp.allclose(out, ref, atol=2e-2, rtol=2e-2)

    # f32-operand path: tighter tolerance.
    out32 = nn_forward_prepared(x, w1t32, b1p32, w2t32, b2p32)
    jax.block_until_ready(out32)
    assert jnp.allclose(out32, ref, atol=1e-4, rtol=1e-4)

    # Multi-tile check — B=200 with tb hint 64 picks tb=40 (divides 200),
    # 5 pipelined grid steps, no batch padding.
    B2 = 200
    x2 = jax.random.normal(kx2, (B2, INPUT_SIZE), jnp.float32)
    out2 = nn_forward_prepared(x2, w1t, b1p, w2t, b2p, tb=64)
    jax.block_until_ready(out2)
    ref2 = jnp.maximum(x2 @ w1.T + b1, 0.0) @ w2.T + b2
    assert out2.shape == (B2, NUM_CLASSES)
    assert jnp.allclose(out2, ref2, atol=2e-2, rtol=2e-2)

    print("KERNEL_OK")
</pallas_src>

<mosaic_0001>
module attributes {stable_mosaic.version = 11 : i64} {
  func.func @_mlp_kernel(%arg0: i32, %arg1: memref<2x784xf32, #tpu.memory_space<vmem>>, %arg2: memref<784x128xbf16, #tpu.memory_space<vmem>>, %arg3: memref<1x128xf32, #tpu.memory_space<vmem>>, %arg4: memref<128x128xbf16, #tpu.memory_space<vmem>>, %arg5: memref<1x128xf32, #tpu.memory_space<vmem>>, %arg6: memref<2x128xf32, #tpu.memory_space<vmem>>) attributes {dimension_semantics = [#tpu.dimension_semantics<parallel>], iteration_bounds = array<i64: 1>, scalar_prefetch = 0 : i64, scratch_operands = 0 : i64, tpu.core_type = #tpu.core_type<tc>, window_params = [{transform_indices = @transform_0, window_bounds = array<i64: 2, 784>}, {pipeline_mode = #tpu.pipeline_mode<synchronous>, transform_indices = @transform_1, window_bounds = array<i64: 784, 128>}, {pipeline_mode = #tpu.pipeline_mode<synchronous>, transform_indices = @transform_2, window_bounds = array<i64: 1, 128>}, {pipeline_mode = #tpu.pipeline_mode<synchronous>, transform_indices = @transform_3, window_bounds = array<i64: 128, 128>}, {pipeline_mode = #tpu.pipeline_mode<synchronous>, transform_indices = @transform_4, window_bounds = array<i64: 1, 128>}, {transform_indices = @transform_5, window_bounds = array<i64: 2, 128>}]} {
    %c0 = arith.constant 0 : index
    %c0_0 = arith.constant 0 : index
    %0 = vector.load %arg1[%c0, %c0_0] : memref<2x784xf32, #tpu.memory_space<vmem>>, vector<2x784xf32>
    %1 = arith.truncf %0 : vector<2x784xf32> to vector<2x784xbf16>
    %c0_1 = arith.constant 0 : index
    %c0_2 = arith.constant 0 : index
    %2 = vector.load %arg2[%c0_1, %c0_2] : memref<784x128xbf16, #tpu.memory_space<vmem>>, vector<784x128xbf16>
    %cst = arith.constant dense<0.000000e+00> : vector<2x128xf32>
    %3 = tpu.matmul %1, %2, %cst {dimension_numbers = #tpu.dot_dimension_numbers<[1], [0], [0], [1], [0, 0, 1, 1], [], []>} : vector<2x784xbf16>, vector<784x128xbf16>, vector<2x128xf32> -> vector<2x128xf32>
    %c0_3 = arith.constant 0 : index
    %c0_4 = arith.constant 0 : index
    %4 = vector.load %arg3[%c0_3, %c0_4] : memref<1x128xf32, #tpu.memory_space<vmem>>, vector<1x128xf32>
    %5 = vector.broadcast %4 : vector<1x128xf32> to vector<2x128xf32>
    %6 = arith.addf %3, %5 : vector<2x128xf32>
    %cst_5 = arith.constant 0.000000e+00 : f32
    %7 = vector.broadcast %cst_5 : f32 to vector<2x128xf32>
    %8 = arith.maximumf %6, %7 : vector<2x128xf32>
    %9 = arith.truncf %8 : vector<2x128xf32> to vector<2x128xbf16>
    %c0_6 = arith.constant 0 : index
    %c0_7 = arith.constant 0 : index
    %10 = vector.load %arg4[%c0_6, %c0_7] : memref<128x128xbf16, #tpu.memory_space<vmem>>, vector<128x128xbf16>
    %cst_8 = arith.constant dense<0.000000e+00> : vector<2x128xf32>
    %11 = tpu.matmul %9, %10, %cst_8 {dimension_numbers = #tpu.dot_dimension_numbers<[1], [0], [0], [1], [0, 0, 1, 1], [], []>} : vector<2x128xbf16>, vector<128x128xbf16>, vector<2x128xf32> -> vector<2x128xf32>
    %c0_9 = arith.constant 0 : index
    %c0_10 = arith.constant 0 : index
    %12 = vector.load %arg5[%c0_9, %c0_10] : memref<1x128xf32, #tpu.memory_space<vmem>>, vector<1x128xf32>
    %13 = vector.broadcast %12 : vector<1x128xf32> to vector<2x128xf32>
    %14 = arith.addf %11, %13 : vector<2x128xf32>
    %c0_11 = arith.constant 0 : index
    %c0_12 = arith.constant 0 : index
    %15 = vector.load %arg6[%c0_11, %c0_12] : memref<2x128xf32, #tpu.memory_space<vmem>>, vector<2x128xf32>
    tpu.vector_store %arg6[%c0_11, %c0_12], %14 {strides = array<i32>} : memref<2x128xf32, #tpu.memory_space<vmem>>, vector<2x128xf32>,
    return
  }
  func.func @transform_0(%arg0: i32) -> (i32, i32) {
    %c0_i32 = arith.constant 0 : i32
    %c0_i32_0 = arith.constant 0 : i32
    return %arg0, %c0_i32 : i32, i32
  }
  func.func @transform_1(%arg0: i32) -> (i32, i32) {
    %c0_i32 = arith.constant 0 : i32
    %c0_i32_0 = arith.constant 0 : i32
    %c0_i32_1 = arith.constant 0 : i32
    return %c0_i32, %c0_i32_0 : i32, i32
  }
  func.func @transform_2(%arg0: i32) -> (i32, i32) {
    %c0_i32 = arith.constant 0 : i32
    %c0_i32_0 = arith.constant 0 : i32
    %c0_i32_1 = arith.constant 0 : i32
    return %c0_i32, %c0_i32_0 : i32, i32
  }
  func.func @transform_3(%arg0: i32) -> (i32, i32) {
    %c0_i32 = arith.constant 0 : i32
    %c0_i32_0 = arith.constant 0 : i32
    %c0_i32_1 = arith.constant 0 : i32
    return %c0_i32, %c0_i32_0 : i32, i32
  }
  func.func @transform_4(%arg0: i32) -> (i32, i32) {
    %c0_i32 = arith.constant 0 : i32
    %c0_i32_0 = arith.constant 0 : i32
    %c0_i32_1 = arith.constant 0 : i32
    return %c0_i32, %c0_i32_0 : i32, i32
  }
  func.func @transform_5(%arg0: i32) -> (i32, i32) {
    %c0_i32 = arith.constant 0 : i32
    %c0_i32_0 = arith.constant 0 : i32
    return %arg0, %c0_i32 : i32, i32
  }
}

</mosaic_0001>

<bundles_post_ra>
// kernel: tpu_custom_call.1
= control target key start
LH: loop header
LB: loop body
LE: loop exit
PB: predicated region body
PF: predicated region fallthrough
CT: control target
= control target key end

     0   :  { %10 = vsyncpa [#allocation3], 0  ;;  %s1243_s0 = inlined_call_operand.hbm [shape: f32[2,784], index: 0, kind: input, shape index: {}]   ;;  %s1244_s1 = inlined_call_operand.hbm [shape: bf16[784,128], index: 1, kind: input, shape index: {}]   ;;  %s1245_s2 = inlined_call_operand.vmem [shape: f32[1,128], index: 2, kind: input, shape index: {}]   ;;  %s1246_s3 = inlined_call_operand.hbm [shape: bf16[128,128], index: 3, kind: input, shape index: {}]   ;;  %s1247_s4 = inlined_call_operand.vmem [shape: f32[1,128], index: 4, kind: input, shape index: {}]   ;;  %s1248_s5 = inlined_call_operand.hbm [shape: f32[2,128], index: 5, kind: output, shape index: {}]  }
   0x1   :  { %11 = vsyncpa [#allocation6], 0 }
   0x2   :  { %12 = vsyncpa [#allocation4], 0  ;;  %s1130_s18 = smov [#allocation5]   ;;  %s1036_s22 = scalar_lea.hbm %s1244_s1, 6272 }
   0x3   :  { %s28_s19 = sshll.u32 %s1130_s18, 4  ;;  %p1037_p0 = scmp.ne.s32.totalorder %s1244_s1, %s1036_s22  ;;  %s29_s19 = int_to_ptr.vmem [resolvable:$true] %s28_s19 }
   0x4   :  { %p1040_p1 = scmp.lt.u32.totalorder %s1036_s22, %s1244_s1 }
   0x6   :  { %p1042_p2 = pnand %p1040_p1, %p1037_p0 }
   0x8   :  { %1045 = shalt.err (!%p1042_p2)
}
   0x9   :  { %s1046_s27 = scalar_lea.vmem %s29_s19, 6272  ;;  %p1051_p4 = scmp.lt.s32.totalorder %s29_s19, %s29_s19 }
   0xa   :  { %p1047_p3 = scmp.ne.s32.totalorder %s29_s19, %s1046_s27  ;;  %p1052_p5 = scmp.lt.s32.totalorder %s1046_s27, %s1046_s27 }
   0xc   :  { %p1053_p6 = por %p1052_p5, %p1051_p4 }
   0xe   :  { %p1054_p7 = pnand %p1053_p6, %p1047_p3 }
  0x10   :  { %1057 = shalt.err (!%p1054_p7)
}
  0x11   :  { %s1131_s28 = smov 64   ;;  %s1132_s29 = smov 4  }
  0x12   :  { %34 = dma.hbm_to_vmem [thread:$0]  %s1244_s1, 6272, %s29_s19, [#allocation6], %s1131_s28, %s1131_s28, %s1132_s29  }
  0x13   :  { %s1133_s7 = smov [#allocation2]   ;;  %s1134_s9 = smov [#allocation7]  }
  0x14   :  { %s19_s8 = sshll.u32 %s1133_s7, 4  ;;  %s42_s10 = sshll.u32 %s1134_s9, 4  ;;  %s20_s8 = int_to_ptr.vmem [resolvable:$true] %s19_s8  ;;  %s43_s10 = int_to_ptr.vmem [resolvable:$true] %s42_s10 }
  0x15   :  { %s1058_s13 = scalar_lea.hbm %s1243_s0, 224 }
  0x16   :  { %p1059_p8 = scmp.ne.s32.totalorder %s1243_s0, %s1058_s13  ;;  %p1062_p9 = scmp.lt.u32.totalorder %s1058_s13, %s1243_s0 }
  0x18   :  { %p1064_p10 = pnand %p1062_p9, %p1059_p8 }
  0x1a   :  { %1067 = shalt.err (!%p1064_p10)
}
  0x1b   :  { %s1068_s1 = scalar_lea.vmem %s20_s8, 224  ;;  %p1073_p12 = scmp.lt.s32.totalorder %s20_s8, %s20_s8 }
  0x1c   :  { %p1069_p11 = scmp.ne.s32.totalorder %s20_s8, %s1068_s1  ;;  %p1074_p13 = scmp.lt.s32.totalorder %s1068_s1, %s1068_s1 }
  0x1e   :  { %p1075_p0 = por %p1074_p13, %p1073_p12 }
  0x20   :  { %p1076_p1 = pnand %p1075_p0, %p1069_p11 }
  0x22   :  { %1079 = shalt.err (!%p1076_p1)
}
  0x23   :  { %22 = dma.hbm_to_vmem [thread:$0]  %s1243_s0, 224, %s20_s8, [#allocation3]  }
  0x24   :  { %s1080_s22 = scalar_lea.hbm %s1246_s3, 1024 }
  0x25   :  { %p1081_p2 = scmp.ne.s32.totalorder %s1246_s3, %s1080_s22  ;;  %p1084_p3 = scmp.lt.u32.totalorder %s1080_s22, %s1246_s3 }
  0x27   :  { %p1086_p4 = pnand %p1084_p3, %p1081_p2 }
  0x29   :  { %1089 = shalt.err (!%p1086_p4)
}
  0x2a   :  { %s1090_s27 = scalar_lea.vmem %s43_s10, 1024  ;;  %p1095_p6 = scmp.lt.s32.totalorder %s43_s10, %s43_s10 }
  0x2b   :  { %p1091_p5 = scmp.ne.s32.totalorder %s43_s10, %s1090_s27  ;;  %p1096_p7 = scmp.lt.s32.totalorder %s1090_s27, %s1090_s27 }
  0x2d   :  { %p1097_p8 = por %p1096_p7, %p1095_p6 }
  0x2f   :  { %p1098_p9 = pnand %p1097_p8, %p1091_p5 }
  0x31   :  { %1101 = shalt.err (!%p1098_p9)
}
  0x32   :  { %48 = dma.hbm_to_vmem [thread:$0]  %s1246_s3, 1024, %s43_s10, [#allocation6], %s1131_s28, %s1131_s28, %s1132_s29  }
  0x33   :  { %1124 = dma.done.wait [#allocation3], 224  }
  0x34   :  { %1125 = vsyncadd [#allocation3], 4294967072 }
  0x35   :  { %1126 = dma.done.wait [#allocation6], 7296  }
  0x36   :  { %1127 = vsyncadd [#allocation6], 4294960000  ;;  %v977_v0 = vld [vmem:[#allocation5 + $0x40] sm:$0xff]   ;;  %v981_v4 = vld [vmem:[#allocation5 + $0x48] sm:$0xff]   ;;  %v1135_v21 = vmov 1983009808   ;;  %v69_v23 = vlaneseq }
  0x37   :  { %v978_v1 = vld [vmem:[#allocation5] sm:$0xff]   ;;  %865 = vmatprep.subr.bf16.mxu0 %v977_v0  ;;  %v982_v5 = vld [vmem:[#allocation5 + $0x8] sm:$0xff]   ;;  %v985_v8 = vld [vmem:[#allocation5 + $0x50] sm:$0xff]   ;;  %v67_v22 = vunpack.c.l.s4 %v1135_v21  ;;  %v1136_v45 = vmov 0.0   ;;  %vm1137_vm0 = vmmov 0   ;;  %vm511_vm1 = vcmask 130048  }
  0x38   :  { %v979_v2 = vld [vmem:[#allocation5 + $0xc0] sm:$0xff]   ;;  %866 = vmatpush3.bf16.msra.mxu0 %v978_v1  ;;  %v983_v6 = vld [vmem:[#allocation5 + $0xc8] sm:$0xff]   ;;  %v986_v9 = vld [vmem:[#allocation5 + $0x10] sm:$0xff]   ;;  %v70_v29 = vshrl.u32 %v69_v23, 7  ;;  %s1138_s6 = smov [#allocation8]  }
  0x39   :  { %v980_v3 = vld [vmem:[#allocation5 + $0x80] sm:$0xff]   ;;  %887 = vmatprep.subr.bf16.mxu1 %v979_v2  ;;  %867 = vmatprep.subr.bf16.mxu0 %v981_v4  ;;  %v984_v7 = vld [vmem:[#allocation5 + $0x88] sm:$0xff]   ;;  %v987_v10 = vld [vmem:[#allocation5 + $0xd0] sm:$0xff]   ;;  %v68_v28 = vunpack.c.0.s8 %v67_v22  ;;  %s795_s7 = sshll.u32 %s1138_s6, 4  ;;  %s796_s7 = int_to_ptr.vmem [resolvable:$true] %s795_s7 }
  0x3a   :  { %888 = vmatpush3.bf16.msra.mxu1 %v980_v3  ;;  %v988_v11 = vld [vmem:[#allocation5 + $0x90] sm:$0xff]   ;;  %v989_v12 = vld [vmem:[#allocation5 + $0x58] sm:$0xff]   ;;  %v993_v16 = vld [vmem:[#allocation5 + $0x60] sm:$0xff]   ;;  %s1102_s8 = scalar_lea.vmem %s796_s7, 32  ;;  %p1107_p11 = scmp.lt.s32.totalorder %s796_s7, %s796_s7 }
  0x3b   :  { %889 = vmatprep.subr.bf16.mxu1 %v983_v6  ;;  %v990_v13 = vld [vmem:[#allocation5 + $0x18] sm:$0xff]   ;;  %v994_v17 = vld [vmem:[#allocation5 + $0x20] sm:$0xff]   ;;  %v997_v20 = vld [vmem:[#allocation5 + $0x68] sm:$0xff]   ;;  %v71_v34 = vsub.s32 %v68_v28, %v70_v29  ;;  %p1103_p10 = scmp.ne.s32.totalorder %s796_s7, %s1102_s8  ;;  %p1108_p12 = scmp.lt.s32.totalorder %s1102_s8, %s1102_s8 }
  0x3c   :  { %868 = vmatpush3.bf16.msra.mxu0 %v982_v5  ;;  %v991_v14 = vld [vmem:[#allocation5 + $0xd8] sm:$0xff]   ;;  %v995_v18 = vld [vmem:[#allocation5 + $0xe0] sm:$0xff]   ;;  %v998_v24 = vld [vmem:[#allocation5 + $0x28] sm:$0xff]  }
  0x3d   :  { %869 = vmatprep.subr.bf16.mxu0 %v985_v8  ;;  %v992_v15 = vld [vmem:[#allocation5 + $0x98] sm:$0xff]   ;;  %v996_v19 = vld [vmem:[#allocation5 + $0xa0] sm:$0xff]   ;;  %v999_v25 = vld [vmem:[#allocation5 + $0xe8] sm:$0xff]   ;;  %p1109_p13 = por %p1108_p12, %p1107_p11 }
  0x3e   :  { %890 = vmatpush3.bf16.msra.mxu1 %v984_v7  ;;  %v1000_v26 = vld [vmem:[#allocation5 + $0xa8] sm:$0xff]   ;;  %v1001_v27 = vld [vmem:[#allocation5 + $0x70] sm:$0xff]   ;;  %v1005_v33 = vld [vmem:[#allocation5 + $0x78] sm:$0xff]  }
  0x3f   :  { %891 = vmatprep.subr.bf16.mxu1 %v987_v10  ;;  %v1002_v30 = vld [vmem:[#allocation5 + $0x30] sm:$0xff]   ;;  %v1006_v35 = vld [vmem:[#allocation5 + $0x38] sm:$0xff]   ;;  %v1009_v41 = vld [vmem:[#allocation5 + $0x140] sm:$0xff]   ;;  %p1110_p0 = pnand %p1109_p13, %p1103_p10 }
  0x40   :  { %870 = vmatpush3.bf16.msra.mxu0 %v986_v9  ;;  %v1003_v31 = vld [vmem:[#allocation5 + $0xf0] sm:$0xff]   ;;  %v1007_v36 = vld [vmem:[#allocation5 + $0xf8] sm:$0xff]   ;;  %v1011_v48 = vld [vmem:[#allocation5 + $0x100] sm:$0xff]  }
  0x41   :  { %871 = vmatprep.subr.bf16.mxu0 %v989_v12  ;;  %v1004_v32 = vld [vmem:[#allocation5 + $0xb0] sm:$0xff]   ;;  %v1008_v39 = vld [vmem:[#allocation5 + $0xb8] sm:$0xff]   ;;  %v1012_v50 = vld [vmem:[#allocation5 + $0x148] sm:$0xff]  }
  0x42   :  { %892 = vmatpush3.bf16.msra.mxu1 %v988_v11  ;;  %v61_v37 = vld [vmem:[#allocation2] sm:$0xff]  ;;  %v1013_v52 = vld [vmem:[#allocation5 + $0x108] sm:$0xff]   ;;  %v1018_v57 = vld [vmem:[#allocation5 + $0x160] sm:$0xff]  }
  0x43   :  { %893 = vmatprep.subr.bf16.mxu1 %v991_v14  ;;  %v72_v38 = vrot.slane %v61_v37, %v71_v34  ;;  %v65_v40 = vcombine.high %v61_v37, %v61_v37  ;;  %v1014_v53 = vld [vmem:[#allocation5 + $0x150] sm:$0xff]   ;;  %v1016_v55 = vld [vmem:[#allocation5 + $0x158] sm:$0xff]   ;;  %v1026_v58 = vld [vmem:[#allocation5 + $0x180] sm:$0xff]  }
  0x44   :  { %872 = vmatpush3.bf16.msra.mxu0 %v990_v13  ;;  %v1015_v54 = vld [vmem:[#allocation5 + $0x110] sm:$0xff]   ;;  %v1017_v56 = vld [vmem:[#allocation5 + $0x118] sm:$0xff]   ;;  %v1019_v60 = vld [vmem:[#allocation5 + $0x120] sm:$0xff]  }
  0x45   :  { %873 = vmatprep.subr.bf16.mxu0 %v993_v16  ;;  %v80_v42 = vcombine.high %v72_v38, %v72_v38  ;;  %v79_v43 = vrot.slane %v65_v40, %v71_v34  ;;  %v105_v44 = vpack.c.bf16 %v72_v38, %v72_v38  ;;  %v62_v59 = vld [vmem:[#allocation2 + $0x8] sm:$0x3f]  ;;  %v1020_v63 = vld [vmem:[#allocation5 + $0x168] sm:$0xff]   ;;  %v1022_v5 = vld [vmem:[#allocation5 + $0x170] sm:$0xff]  }
  0x46   :  { %894 = vmatpush3.bf16.msra.mxu1 %v992_v15  ;;  %v82_v61 = vcombine.high %v62_v59, %v62_v59  ;;  %v89_v62 = vrot.slane %v62_v59, %v71_v34  ;;  %v1021_v4 = vld [vmem:[#allocation5 + $0x128] sm:$0xff]   ;;  %v1023_v6 = vld [vmem:[#allocation5 + $0x130] sm:$0xff]   ;;  %v1024_v7 = vld [vmem:[#allocation5 + $0x178] sm:$0xff]  }
  0x47   :  { %895 = vmatprep.subr.bf16.mxu1 %v995_v18  ;;  %v106_v46 = vpack.c.bf16 %v80_v42, %v80_v42  ;;  %v81_v47 = vcombine.high %v79_v43, %v79_v43  ;;  %v107_v49 = vpack.c.bf16 %v79_v43, %v79_v43  ;;  %v1025_v8 = vld [vmem:[#allocation5 + $0x138] sm:$0xff]   ;;  %v1028_v10 = vld [vmem:[#allocation7] sm:$0xff]   ;;  %v1029_v11 = vld [vmem:[#allocation7 + $0x8] sm:$0xff]  }
  0x48   :  { %874 = vmatpush3.bf16.msra.mxu0 %v994_v17  ;;  %v96_v0 = vrot.slane %v82_v61, %v71_v34  ;;  %v97_v1 = vcombine.high %v89_v62, %v89_v62  ;;  %v109_v9 = vpack.c.bf16 %v89_v62, %v89_v62  ;;  %v1030_v12 = vld [vmem:[#allocation7 + $0x10] sm:$0xff]   ;;  %v1031_v13 = vld [vmem:[#allocation7 + $0x18] sm:$0xff]   ;;  %v1032_v14 = vld [vmem:[#allocation7 + $0x20] sm:$0xff]  }
  0x49   :  { %875 = vmatprep.subr.bf16.mxu0 %v997_v20  ;;  %547 = vmatprep.mubr.bf16.mxu0 %v106_v46  ;;  %v108_v51 = vpack.c.bf16 %v81_v47, %v81_v47  ;;  %v1033_v15 = vld [vmem:[#allocation7 + $0x28] sm:$0xff]   ;;  %v1034_v16 = vld [vmem:[#allocation7 + $0x30] sm:$0xff]   ;;  %v1035_v17 = vld [vmem:[#allocation7 + $0x38] sm:$0xff]  }
  0x4a   :  { %896 = vmatpush3.bf16.msra.mxu1 %v996_v19  ;;  %v110_v2 = vpack.c.bf16 %v97_v1, %v97_v1  ;;  %v111_v3 = vpack.c.bf16 %v96_v0, %v96_v0  ;;  %v805_v19 = vld [vmem:[%s1245_s2] ss:$0 sm:$0xff] }
  0x4b   :  { %897 = vmatprep.subr.bf16.mxu1 %v999_v25  ;;  %587 = vmatprep.mubr.bf16.mxu1 %v108_v51 }
  0x4c   :  { %876 = vmatpush3.bf16.msra.mxu0 %v998_v24 }
  0x4d   :  { %877 = vmatprep.subr.bf16.mxu0 %v1001_v27 }
  0x4e   :  { %898 = vmatpush3.bf16.msra.mxu1 %v1000_v26 }
  0x4f   :  { %899 = vmatprep.subr.bf16.mxu1 %v1003_v31 }
  0x50   :  { %878 = vmatpush3.bf16.msra.mxu0 %v1002_v30 }
  0x51   :  { %879 = vmatprep.subr.bf16.mxu0 %v1005_v33 }
  0x52   :  { %900 = vmatpush3.bf16.msra.mxu1 %v1004_v32 }
  0x53   :  { %901 = vmatprep.subr.bf16.mxu1 %v1007_v36 }
  0x54   :  { %880 = vmatpush3.bf16.msra.mxu0 %v1006_v35 }
  0x55   :  { %909 = vmatprep.subr.bf16.mxu0 %v1009_v41 }
  0x56   :  { %902 = vmatpush3.bf16.msra.mxu1 %v1008_v39 }
  0x57   :  { %942 = vmatprep.subr.bf16.mxu1 %v1136_v45  ;;  %548 = vmatmul.mubr.bf16.vlgmr.msra.gmra.mrb[0].mxu0 %v105_v44  ;;  %v856_v44 = vld [vmem:[%s1247_s4] ss:$0 sm:$0xff] }
  0x58   :  { %910 = vmatpush3.bf16.msra.mxu0 %v1011_v48  ;;  %627 = vmatprep.mubr.bf16.mxu0 %v110_v2 }
  0x59   :  { %588 = vmatmul.mubr.bf16.vlgmr.msra.gmra.mrb[0].mxu1 %v107_v49  ;;  %911 = vmatprep.subr.bf16.mxu0 %v1012_v50 }
  0x5a   :  { %944 = vmatprep.mubr.msk.bf16.mxu1 %vm1137_vm0, %v1136_v45  ;;  %943 = vmatpush3.bf16.msra.mxu1 %v1026_v58 }
  0x5b   :  { %948 = vmatprep.subr.bf16.mxu1 %v1136_v45 }
  0x5c   :  { %912 = vmatpush3.bf16.msra.mxu0 %v1013_v52 }
  0x5d   :  { %913 = vmatprep.subr.bf16.mxu0 %v1014_v53 }
  0x60   :  { %914 = vmatpush3.bf16.msra.mxu0 %v1015_v54 }
  0x61   :  { %915 = vmatprep.subr.bf16.mxu0 %v1016_v55  ;;  %945 = vmatmul.mubr.msk.bf16.vlgmr.msra.gmra.mrb[4].mxu1 %vm511_vm1, %v111_v3 }
  0x62   :  { %964 = vmatprep.mubr.msk.bf16.mxu1 %vm1137_vm0, %v1136_v45  ;;  %949 = vmatpush3.bf16.msra.mxu1 %v1028_v10 }
  0x63   :  { %950 = vmatprep.subr.bf16.mxu1 %v1136_v45 }
  0x64   :  { %916 = vmatpush3.bf16.msra.mxu0 %v1017_v56 }
  0x65   :  { %917 = vmatprep.subr.bf16.mxu0 %v1018_v57 }
  0x66   :  { %951 = vmatpush3.bf16.msra.mxu1 %v1029_v11 }
  0x67   :  { %952 = vmatprep.subr.bf16.mxu1 %v1136_v45 }
  0x68   :  { %918 = vmatpush3.bf16.msra.mxu0 %v1019_v60 }
  0x69   :  { %919 = vmatprep.subr.bf16.mxu0 %v1020_v63 }
  0x6a   :  { %953 = vmatpush3.bf16.msra.mxu1 %v1030_v12 }
  0x6b   :  { %954 = vmatprep.subr.bf16.mxu1 %v1136_v45 }
  0x6c   :  { %920 = vmatpush3.bf16.msra.mxu0 %v1021_v4 }
  0x6d   :  { %921 = vmatprep.subr.bf16.mxu0 %v1022_v5 }
  0x6e   :  { %955 = vmatpush3.bf16.msra.mxu1 %v1031_v13 }
  0x6f   :  { %956 = vmatprep.subr.bf16.mxu1 %v1136_v45 }
  0x70   :  { %922 = vmatpush3.bf16.msra.mxu0 %v1023_v6 }
  0x71   :  { %923 = vmatprep.subr.bf16.mxu0 %v1024_v7 }
  0x72   :  { %957 = vmatpush3.bf16.msra.mxu1 %v1032_v14 }
  0x73   :  { %958 = vmatprep.subr.bf16.mxu1 %v1136_v45 }
  0x74   :  { %924 = vmatpush3.bf16.msra.mxu0 %v1025_v8 }
  0x76   :  { %959 = vmatpush3.bf16.msra.mxu1 %v1033_v15 }
  0x77   :  { %628 = vmatmul.mubr.bf16.vlgmr.msra.gmra.mrb[4].mxu0 %v109_v9  ;;  %960 = vmatprep.subr.bf16.mxu1 %v1136_v45 }
  0x7a   :  { %961 = vmatpush3.bf16.msra.mxu1 %v1034_v16 }
  0x7b   :  { %962 = vmatprep.subr.bf16.mxu1 %v1136_v45 }
  0x7e   :  { %963 = vmatpush3.bf16.msra.mxu1 %v1035_v17 }
 0x12a   :  { %v881_v18 = vpop.f32.mrb[0].mxu0 }
 0x12b   :  { %v882_v20 = vpop.f32.mrb[1].mxu0 }
 0x12c   :  { %v883_v21 = vadd.f32 %v882_v20, %v881_v18  ;;  %v884_v22 = vpop.f32.mrb[2].mxu0  ;;  %v903_v23 = vpop.f32.mrb[0].mxu1 }
 0x12d   :  { %v885_v24 = vpop.f32.mrb[3].mxu0  ;;  %v904_v25 = vpop.f32.mrb[1].mxu1 }
 0x12e   :  { %v550_v26 = vadd.f32 %v883_v21, %v805_v19  ;;  %v905_v27 = vadd.f32 %v904_v25, %v903_v23  ;;  %v906_v28 = vpop.f32.mrb[2].mxu1 }
 0x12f   :  { %v907_v29 = vpop.f32.mrb[3].mxu1 }
 0x130   :  { %v590_v30 = vadd.f32 %v905_v27, %v550_v26 }
 0x134   :  { %v669_v31 = vpop.f32.mrb[4].mxu1 }
 0x135   :  { %v946_v32 = vpop.f32.mrb[5].mxu1 }
 0x136   :  { %v672_v33 = vpop.f32.mrb[6].mxu1 }
 0x137   :  { %v947_v34 = vpop.f32.mrb[7].mxu1 }
 0x14a   :  { %v925_v35 = vpop.f32.mrb[4].mxu0 }
 0x14b   :  { %v926_v36 = vpop.f32.mrb[5].mxu0 }
 0x14c   :  { %v927_v37 = vadd.f32 %v926_v36, %v925_v35  ;;  %v928_v38 = vpop.f32.mrb[6].mxu0 }
 0x14d   :  { %v929_v39 = vpop.f32.mrb[7].mxu0 }
 0x14e   :  { %v630_v40 = vadd.f32 %v927_v37, %v590_v30 }
 0x150   :  { %v670_v41 = vadd.f32 %v669_v31, %v630_v40 }
 0x152   :  { %v675_v42 = vmax.f32 %v670_v41, 0.0 }
 0x154   :  { %v676_v43 = vpack.c.bf16 %v675_v42, %v675_v42 }
 0x156   :  { %965 = vmatmul.mubr.bf16.vlgmr.msra.gmra.mrb[8].mxu1 %v676_v43 }
 0x229   :  { %v782_v45 = vpop.f32.mrb[8].mxu1 }
 0x22a   :  { %v783_v46 = vadd.f32 %v856_v44, %v782_v45  ;;  %v966_v47 = vpop.f32.mrb[9].mxu1 }
 0x22b   :  { %v785_v48 = vpop.f32.mrb[10].mxu1 }
 0x22c   :  { %788 = vst [vmem:[#allocation8] sm:$0x3] %v783_v46  ;;  %v967_v49 = vpop.f32.mrb[11].mxu1 }
 0x22d   :  { %1113 = shalt.err (!%p1110_p0)
}
 0x22e   :  { %s1114_s4 = scalar_lea.hbm %s1248_s5, 32 }
 0x22f   :  { %p1115_p1 = scmp.ne.s32.totalorder %s1248_s5, %s1114_s4  ;;  %p1118_p2 = scmp.lt.u32.totalorder %s1114_s4, %s1248_s5 }
 0x231   :  { %p1120_p3 = pnand %p1118_p2, %p1115_p1 }
 0x233   :  { %1123 = shalt.err (!%p1120_p3)
}
 0x234   :  { %798 = dma.vmem_to_hbm [thread:$0]  %s796_s7, 32, %s1248_s5, [#allocation4]  }
 0x235   :  { %1128 = dma.done.wait [#allocation4], 32  }
 0x236   :  { %1129 = vsyncadd [#allocation4], 4294967264 }
 0x237   :  { %802 = vsyncpa [#allocation3], 1 }
 0x238   :  { %803 = vsyncpa [#allocation6], 1 }
 0x239   :  { %804 = vsyncpa [#allocation4], 1 }

</bundles_post_ra>
